<compile_context>
chip_gen: v6e
topology: v6e:2x2x1
jax: 0.10.0
libtpu: 0.0.40
codegen_flags: <defaults>
</compile_context>

<pallas_src>
import jax
import jax.numpy as jnp
from jax.experimental import pallas as pl
from jax.experimental.pallas import tpu as pltpu


def classifier_kernel(x_ref, w1_ref, b1_ref, w2_ref, b2_ref, w3_ref, b3_ref, o_ref):
    # x_ref: (tile_n, C, HW) in VMEM, lane-dense along HW.
    x = x_ref[...]

    # AvgPool2d(37, 1) with H = W = 37  ==>  mean over the HW axis -> (tile_n, C).
    hw = x.shape[-1]
    pooled = jnp.sum(x, axis=-1) * (1.0 / hw)

    # fconv1 (1x1 conv == channel matmul) + ReLU
    h = jnp.dot(pooled, w1_ref[...], preferred_element_type=jnp.float32) + b1_ref[...]
    h = jnp.maximum(h, 0.0)

    # fconv2 + ReLU
    h = jnp.dot(h, w2_ref[...], preferred_element_type=jnp.float32) + b2_ref[...]
    h = jnp.maximum(h, 0.0)

    # fconv3 -> logits over nclasses
    logits = jnp.dot(h, w3_ref[...], preferred_element_type=jnp.float32) + b3_ref[...]

    # log_softmax over the class axis (numerically stable)
    m = jnp.max(logits, axis=-1, keepdims=True)
    shifted = logits - m
    lse = jnp.log(jnp.sum(jnp.exp(shifted), axis=-1, keepdims=True))
    o_ref[...] = (shifted - lse).astype(o_ref.dtype)


def _device_kind():
    try:
        return jax.devices()[0].device_kind.lower()
    except Exception:
        return ""


def _tiling_and_vmem(N, C, HW, nclasses):
    """Pick tile_n and a scoped-VMEM limit per TPU generation."""
    kind = _device_kind()
    is_v7 = "v7" in kind  # 64 MiB VMEM per TC, 2 TCs/chip

    # f32 block footprint, lane-padded (HW=1369 -> 1408 lanes).
    hw_pad = pl.cdiv(HW, 128) * 128
    bytes_per_sample_in = C * hw_pad * 4          # ~44 KiB for C=8
    bytes_per_sample_out = pl.cdiv(nclasses, 128) * 128 * 4

    # v7x: 256-row tiles keep double-buffered input ~23 MiB (vs 64 MiB VMEM);
    # v6e/v5e (128 MiB VMEM): 512-row tiles (~85% of HBM roofline) with a
    # raised scoped-VMEM limit.
    max_tile = 256 if is_v7 else 512
    tile_n = min(N, max_tile)
    if is_v7 and N > 8:
        # Guarantee >=2 grid steps so the "parallel" batch axis shards across
        # both TensorCores instead of leaving one idle.
        tile_n = min(tile_n, max(8, pl.cdiv(N, 2)))
    tile_n = max(1, tile_n)

    in_block = tile_n * bytes_per_sample_in
    out_block = tile_n * bytes_per_sample_out
    # double-buffered input + output + weights/compiler scratch headroom
    vmem_limit = 2 * in_block + 2 * out_block + (8 << 20)
    vmem_limit = max(vmem_limit, 32 << 20)
    vmem_limit = min(vmem_limit, (48 << 20) if is_v7 else (64 << 20))
    return tile_n, int(vmem_limit)


def classifier_forward(x_nchw, params):
    """x_nchw: (N, ndf, H, W) with H == W == 37 (full-window AvgPool)."""
    N, C, H, W = x_nchw.shape
    # TODO(synk): general AvgPool2d(37, stride=1) with H,W > 37 (multi-window
    # spatial output) is not implemented; the module is used with 37x37 maps
    # (spatial output 1x1).
    assert H == 37 and W == 37, "AvgPool2d(37,1) expects 37x37 spatial input here"

    w1, b1, w2, b2, w3, b3 = params
    nclasses = w3.shape[1]
    HW = H * W

    # Free reshape of contiguous NCHW -> (N, C, HW). No transpose, no cast.
    x = x_nchw.reshape(N, C, HW)

    tile_n, vmem_limit = _tiling_and_vmem(N, C, HW, nclasses)
    grid = (pl.cdiv(N, tile_n),)

    # Advisory cost estimate: memory-bound (one contiguous HBM read per tile).
    param_bytes = 4 * (2 * C * C + 2 * C + C * nclasses + nclasses)
    cost = pl.CostEstimate(
        flops=int(N * (C * HW + 2 * C * C * 2 + 2 * C * nclasses)),
        transcendentals=int(N * (nclasses + 1)),
        bytes_accessed=int(N * C * HW * 4 + N * nclasses * 4 + param_bytes),
    )

    out = pl.pallas_call(
        classifier_kernel,
        out_shape=jax.ShapeDtypeStruct((N, nclasses), jnp.float32),
        grid=grid,
        in_specs=[
            pl.BlockSpec((tile_n, C, HW), lambda i: (i, 0, 0)),
            pl.BlockSpec((C, C), lambda i: (0, 0)),
            pl.BlockSpec((1, C), lambda i: (0, 0)),
            pl.BlockSpec((C, C), lambda i: (0, 0)),
            pl.BlockSpec((1, C), lambda i: (0, 0)),
            pl.BlockSpec((C, nclasses), lambda i: (0, 0)),
            pl.BlockSpec((1, nclasses), lambda i: (0, 0)),
        ],
        out_specs=pl.BlockSpec((tile_n, nclasses), lambda i: (i, 0)),
        compiler_params=pltpu.CompilerParams(
            dimension_semantics=("parallel",),
            vmem_limit_bytes=vmem_limit,
        ),
        cost_estimate=cost,
    )(x, w1, b1, w2, b2, w3, b3)

    # Match PyTorch pred.squeeze(): (1, nclasses, 1, 1) -> (nclasses,) for N == 1.
    if N == 1:
        return out[0]
    return out


def init_params(key, ndf, nclasses):
    """Deterministic synthetic parameters.

    PyTorch Conv2d 1x1 weights are (out_ch, in_ch, 1, 1); we store them
    transposed as (in_ch, out_ch) so the kernel can do `h @ W`.
    """
    k1, k2, k3, k4, k5, k6 = jax.random.split(key, 6)
    scale = 0.1
    w1 = scale * jax.random.normal(k1, (ndf, ndf), jnp.float32)
    b1 = scale * jax.random.normal(k2, (1, ndf), jnp.float32)
    w2 = scale * jax.random.normal(k3, (ndf, ndf), jnp.float32)
    b2 = scale * jax.random.normal(k4, (1, ndf), jnp.float32)
    w3 = scale * jax.random.normal(k5, (ndf, nclasses), jnp.float32)
    b3 = scale * jax.random.normal(k6, (1, nclasses), jnp.float32)
    return (w1, b1, w2, b2, w3, b3)


def reference_forward(x_nchw, params):
    """Plain-JAX reference mirroring the PyTorch module."""
    w1, b1, w2, b2, w3, b3 = params
    pooled = jnp.mean(x_nchw, axis=(2, 3))                       # AvgPool2d(37,1) -> (N, C)
    h = jnp.maximum(pooled @ w1 + b1, 0.0)
    h = jnp.maximum(h @ w2 + b2, 0.0)
    logits = h @ w3 + b3
    return jax.nn.log_softmax(logits, axis=-1)                   # squeeze() -> (N, nclasses)


if __name__ == "__main__":
    ndf = 8
    nclasses = 10
    ngroups = 1  # unused in forward (matches PyTorch module)
    N, H, W = 2, 37, 37

    key = jax.random.PRNGKey(0)
    kx, kp = jax.random.split(key)
    x = jax.random.normal(kx, (N, ndf, H, W), jnp.float32)
    params = init_params(kp, ndf, nclasses)

    pred = classifier_forward(x, params)
    pred = jax.block_until_ready(pred)

    ref = reference_forward(x, params)
    assert pred.shape == (N, nclasses)
    assert jnp.allclose(pred, ref, atol=1e-5, rtol=1e-5), "mismatch vs JAX reference"

    print("KERNEL_OK")
</pallas_src>

<mosaic_0001>
module attributes {stable_mosaic.version = 11 : i64} {
  func.func @classifier_kernel(%arg0: i32, %arg1: memref<2x8x1369xf32, #tpu.memory_space<vmem>>, %arg2: memref<8x8xf32, #tpu.memory_space<vmem>>, %arg3: memref<1x8xf32, #tpu.memory_space<vmem>>, %arg4: memref<8x8xf32, #tpu.memory_space<vmem>>, %arg5: memref<1x8xf32, #tpu.memory_space<vmem>>, %arg6: memref<8x10xf32, #tpu.memory_space<vmem>>, %arg7: memref<1x10xf32, #tpu.memory_space<vmem>>, %arg8: memref<2x10xf32, #tpu.memory_space<vmem>>) attributes {dimension_semantics = [#tpu.dimension_semantics<parallel>], iteration_bounds = array<i64: 1>, scalar_prefetch = 0 : i64, scratch_operands = 0 : i64, tpu.core_type = #tpu.core_type<tc>, window_params = [{transform_indices = @transform_0, window_bounds = array<i64: 2, 8, 1369>}, {pipeline_mode = #tpu.pipeline_mode<synchronous>, transform_indices = @transform_1, window_bounds = array<i64: 8, 8>}, {pipeline_mode = #tpu.pipeline_mode<synchronous>, transform_indices = @transform_2, window_bounds = array<i64: 1, 8>}, {pipeline_mode = #tpu.pipeline_mode<synchronous>, transform_indices = @transform_3, window_bounds = array<i64: 8, 8>}, {pipeline_mode = #tpu.pipeline_mode<synchronous>, transform_indices = @transform_4, window_bounds = array<i64: 1, 8>}, {pipeline_mode = #tpu.pipeline_mode<synchronous>, transform_indices = @transform_5, window_bounds = array<i64: 8, 10>}, {pipeline_mode = #tpu.pipeline_mode<synchronous>, transform_indices = @transform_6, window_bounds = array<i64: 1, 10>}, {transform_indices = @transform_7, window_bounds = array<i64: 2, 10>}]} {
    %c0 = arith.constant 0 : index
    %c0_0 = arith.constant 0 : index
    %c0_1 = arith.constant 0 : index
    %0 = vector.load %arg1[%c0, %c0_0, %c0_1] : memref<2x8x1369xf32, #tpu.memory_space<vmem>>, vector<2x8x1369xf32>
    %cst = arith.constant dense<0.000000e+00> : vector<2x8xf32>
    %1 = vector.multi_reduction <add>, %0, %cst [2] : vector<2x8x1369xf32> to vector<2x8xf32>
    %cst_2 = arith.constant 7.30460219E-4 : f32
    %2 = vector.broadcast %cst_2 : f32 to vector<2x8xf32>
    %3 = arith.mulf %1, %2 : vector<2x8xf32>
    %c0_3 = arith.constant 0 : index
    %c0_4 = arith.constant 0 : index
    %4 = vector.load %arg2[%c0_3, %c0_4] : memref<8x8xf32, #tpu.memory_space<vmem>>, vector<8x8xf32>
    %cst_5 = arith.constant dense<0.000000e+00> : vector<2x8xf32>
    %5 = tpu.matmul %3, %4, %cst_5 {dimension_numbers = #tpu.dot_dimension_numbers<[1], [0], [0], [1], [0, 0, 1, 1], [], []>} : vector<2x8xf32>, vector<8x8xf32>, vector<2x8xf32> -> vector<2x8xf32>
    %c0_6 = arith.constant 0 : index
    %c0_7 = arith.constant 0 : index
    %6 = vector.load %arg3[%c0_6, %c0_7] : memref<1x8xf32, #tpu.memory_space<vmem>>, vector<1x8xf32>
    %7 = vector.broadcast %6 : vector<1x8xf32> to vector<2x8xf32>
    %8 = arith.addf %5, %7 : vector<2x8xf32>
    %cst_8 = arith.constant 0.000000e+00 : f32
    %9 = vector.broadcast %cst_8 : f32 to vector<2x8xf32>
    %10 = arith.maximumf %8, %9 : vector<2x8xf32>
    %c0_9 = arith.constant 0 : index
    %c0_10 = arith.constant 0 : index
    %11 = vector.load %arg4[%c0_9, %c0_10] : memref<8x8xf32, #tpu.memory_space<vmem>>, vector<8x8xf32>
    %cst_11 = arith.constant dense<0.000000e+00> : vector<2x8xf32>
    %12 = tpu.matmul %10, %11, %cst_11 {dimension_numbers = #tpu.dot_dimension_numbers<[1], [0], [0], [1], [0, 0, 1, 1], [], []>} : vector<2x8xf32>, vector<8x8xf32>, vector<2x8xf32> -> vector<2x8xf32>
    %c0_12 = arith.constant 0 : index
    %c0_13 = arith.constant 0 : index
    %13 = vector.load %arg5[%c0_12, %c0_13] : memref<1x8xf32, #tpu.memory_space<vmem>>, vector<1x8xf32>
    %14 = vector.broadcast %13 : vector<1x8xf32> to vector<2x8xf32>
    %15 = arith.addf %12, %14 : vector<2x8xf32>
    %cst_14 = arith.constant 0.000000e+00 : f32
    %16 = vector.broadcast %cst_14 : f32 to vector<2x8xf32>
    %17 = arith.maximumf %15, %16 : vector<2x8xf32>
    %c0_15 = arith.constant 0 : index
    %c0_16 = arith.constant 0 : index
    %18 = vector.load %arg6[%c0_15, %c0_16] : memref<8x10xf32, #tpu.memory_space<vmem>>, vector<8x10xf32>
    %cst_17 = arith.constant dense<0.000000e+00> : vector<2x10xf32>
    %19 = tpu.matmul %17, %18, %cst_17 {dimension_numbers = #tpu.dot_dimension_numbers<[1], [0], [0], [1], [0, 0, 1, 1], [], []>} : vector<2x8xf32>, vector<8x10xf32>, vector<2x10xf32> -> vector<2x10xf32>
    %c0_18 = arith.constant 0 : index
    %c0_19 = arith.constant 0 : index
    %20 = vector.load %arg7[%c0_18, %c0_19] : memref<1x10xf32, #tpu.memory_space<vmem>>, vector<1x10xf32>
    %21 = vector.broadcast %20 : vector<1x10xf32> to vector<2x10xf32>
    %22 = arith.addf %19, %21 : vector<2x10xf32>
    %cst_20 = arith.constant dense<0xFF800000> : vector<2xf32>
    %23 = vector.multi_reduction <maximumf>, %22, %cst_20 [1] : vector<2x10xf32> to vector<2xf32>
    %24 = vector.shape_cast %23 : vector<2xf32> to vector<2x1xf32>
    %25 = vector.broadcast %24 : vector<2x1xf32> to vector<2x10xf32>
    %26 = arith.subf %22, %25 : vector<2x10xf32>
    %27 = math.exp %26 : vector<2x10xf32>
    %cst_21 = arith.constant dense<0.000000e+00> : vector<2xf32>
    %28 = vector.multi_reduction <add>, %27, %cst_21 [1] : vector<2x10xf32> to vector<2xf32>
    %29 = vector.shape_cast %28 : vector<2xf32> to vector<2x1xf32>
    %30 = math.log %29 : vector<2x1xf32>
    %31 = vector.broadcast %30 : vector<2x1xf32> to vector<2x10xf32>
    %32 = arith.subf %26, %31 : vector<2x10xf32>
    %c0_22 = arith.constant 0 : index
    %c0_23 = arith.constant 0 : index
    %33 = vector.load %arg8[%c0_22, %c0_23] : memref<2x10xf32, #tpu.memory_space<vmem>>, vector<2x10xf32>
    tpu.vector_store %arg8[%c0_22, %c0_23], %32 {strides = array<i32>} : memref<2x10xf32, #tpu.memory_space<vmem>>, vector<2x10xf32>,
    return
  }
  func.func @transform_0(%arg0: i32) -> (i32, i32, i32) {
    %c0_i32 = arith.constant 0 : i32
    %c0_i32_0 = arith.constant 0 : i32
    %c0_i32_1 = arith.constant 0 : i32
    return %arg0, %c0_i32, %c0_i32_0 : i32, i32, i32
  }
  func.func @transform_1(%arg0: i32) -> (i32, i32) {
    %c0_i32 = arith.constant 0 : i32
    %c0_i32_0 = arith.constant 0 : i32
    %c0_i32_1 = arith.constant 0 : i32
    return %c0_i32, %c0_i32_0 : i32, i32
  }
  func.func @transform_2(%arg0: i32) -> (i32, i32) {
    %c0_i32 = arith.constant 0 : i32
    %c0_i32_0 = arith.constant 0 : i32
    %c0_i32_1 = arith.constant 0 : i32
    return %c0_i32, %c0_i32_0 : i32, i32
  }
  func.func @transform_3(%arg0: i32) -> (i32, i32) {
    %c0_i32 = arith.constant 0 : i32
    %c0_i32_0 = arith.constant 0 : i32
    %c0_i32_1 = arith.constant 0 : i32
    return %c0_i32, %c0_i32_0 : i32, i32
  }
  func.func @transform_4(%arg0: i32) -> (i32, i32) {
    %c0_i32 = arith.constant 0 : i32
    %c0_i32_0 = arith.constant 0 : i32
    %c0_i32_1 = arith.constant 0 : i32
    return %c0_i32, %c0_i32_0 : i32, i32
  }
  func.func @transform_5(%arg0: i32) -> (i32, i32) {
    %c0_i32 = arith.constant 0 : i32
    %c0_i32_0 = arith.constant 0 : i32
    %c0_i32_1 = arith.constant 0 : i32
    return %c0_i32, %c0_i32_0 : i32, i32
  }
  func.func @transform_6(%arg0: i32) -> (i32, i32) {
    %c0_i32 = arith.constant 0 : i32
    %c0_i32_0 = arith.constant 0 : i32
    %c0_i32_1 = arith.constant 0 : i32
    return %c0_i32, %c0_i32_0 : i32, i32
  }
  func.func @transform_7(%arg0: i32) -> (i32, i32) {
    %c0_i32 = arith.constant 0 : i32
    %c0_i32_0 = arith.constant 0 : i32
    return %arg0, %c0_i32 : i32, i32
  }
}

</mosaic_0001>

<bundles_post_ra>
// kernel: tpu_custom_call.1
= control target key start
LH: loop header
LB: loop body
LE: loop exit
PB: predicated region body
PF: predicated region fallthrough
CT: control target
= control target key end

     0   :  { %12 = vsyncpa [#allocation3], 0  ;;  %s647_s0 = inlined_call_operand.hbm [shape: f32[2,8,1369], index: 0, kind: input, shape index: {}]   ;;  %s648_s1 = inlined_call_operand.hbm [shape: f32[8,8], index: 1, kind: input, shape index: {}]   ;;  %s649_s2 = inlined_call_operand.vmem [shape: f32[1,8], index: 2, kind: input, shape index: {}]   ;;  %s650_s3 = inlined_call_operand.hbm [shape: f32[8,8], index: 3, kind: input, shape index: {}]   ;;  %s651_s4 = inlined_call_operand.hbm [shape: f32[1,8], index: 4, kind: input, shape index: {}]   ;;  %s652_s5 = inlined_call_operand.vmem [shape: f32[8,10], index: 5, kind: input, shape index: {}]   ;;  %s653_s6 = inlined_call_operand.vmem [shape: f32[1,10], index: 6, kind: input, shape index: {}]   ;;  %s654_s7 = inlined_call_operand.hbm [shape: f32[2,10], index: 7, kind: output, shape index: {}]  }
   0x1   :  { %13 = vsyncpa [#allocation6], 0 }
   0x2   :  { %14 = vsyncpa [#allocation9], 0 }
   0x3   :  { %15 = vsyncpa [#allocation4], 0  ;;  %s565_s24 = smov [#allocation5]   ;;  %s566_s26 = smov [#allocation2]  }
   0x4   :  { %s34_s25 = sshll.u32 %s565_s24, 4  ;;  %s21_s27 = sshll.u32 %s566_s26, 4  ;;  %s35_s25 = int_to_ptr.vmem [resolvable:$true] %s34_s25  ;;  %s22_s27 = int_to_ptr.vmem [resolvable:$true] %s21_s27 }
   0x5   :  { %s465_s28 = scalar_lea.vmem %s35_s25, 128  ;;  %p470_p1 = scmp.lt.s32.totalorder %s35_s25, %s35_s25 }
   0x6   :  { %p466_p0 = scmp.ne.s32.totalorder %s35_s25, %s465_s28  ;;  %p471_p2 = scmp.lt.s32.totalorder %s465_s28, %s465_s28 }
   0x8   :  { %p472_p3 = por %p471_p2, %p470_p1 }
   0xa   :  { %p473_p4 = pnand %p472_p3, %p466_p0 }
   0xc   :  { %476 = shalt.err (!%p473_p4)
}
   0xd   :  { %37 = dma.hbm_to_vmem [thread:$0]  %s648_s1, 128, %s35_s25, [#allocation6]  }
   0xe   :  { %s485_s8 = scalar_lea.vmem %s22_s27, 2816  ;;  %p490_p6 = scmp.lt.s32.totalorder %s22_s27, %s22_s27 }
   0xf   :  { %p486_p5 = scmp.ne.s32.totalorder %s22_s27, %s485_s8  ;;  %p491_p7 = scmp.lt.s32.totalorder %s485_s8, %s485_s8 }
  0x11   :  { %p492_p8 = por %p491_p7, %p490_p6 }
  0x13   :  { %p493_p9 = pnand %p492_p8, %p486_p5 }
  0x15   :  { %496 = shalt.err (!%p493_p9)
}
  0x16   :  { %s567_s9 = smov 1408   ;;  %s568_s10 = smov 88  }
  0x17   :  { %27 = dma.hbm_to_vmem [thread:$0]  %s647_s0, 2816, %s22_s27, [#allocation3], %s567_s9, %s567_s9, %s568_s10  }
  0x18   :  { %s569_s13 = smov [#allocation7]   ;;  %s570_s15 = smov [#allocation8]  }
  0x19   :  { %s46_s14 = sshll.u32 %s569_s13, 4  ;;  %s56_s16 = sshll.u32 %s570_s15, 4  ;;  %s47_s14 = int_to_ptr.vmem [resolvable:$true] %s46_s14  ;;  %s57_s16 = int_to_ptr.vmem [resolvable:$true] %s56_s16 }
  0x1a   :  { %s505_s1 = scalar_lea.vmem %s47_s14, 128  ;;  %p510_p11 = scmp.lt.s32.totalorder %s47_s14, %s47_s14 }
  0x1b   :  { %p506_p10 = scmp.ne.s32.totalorder %s47_s14, %s505_s1  ;;  %p511_p12 = scmp.lt.s32.totalorder %s505_s1, %s505_s1 }
  0x1d   :  { %p512_p13 = por %p511_p12, %p510_p11 }
  0x1f   :  { %p513_p0 = pnand %p512_p13, %p506_p10 }
  0x21   :  { %516 = shalt.err (!%p513_p0)
}
  0x22   :  { %49 = dma.hbm_to_vmem [thread:$0]  %s650_s3, 128, %s47_s14, [#allocation6]  }
  0x23   :  { %s525_s19 = scalar_lea.vmem %s57_s16, 16  ;;  %s529_s0 = scalar_lea.vmem %s57_s16, 32 }
  0x24   :  { %p526_p1 = scmp.ne.s32.totalorder %s57_s16, %s525_s19  ;;  %p530_p2 = scmp.lt.s32.totalorder %s57_s16, %s57_s16 }
  0x25   :  { %p531_p3 = scmp.lt.s32.totalorder %s529_s0, %s525_s19 }
  0x27   :  { %p532_p4 = por %p531_p3, %p530_p2 }
  0x29   :  { %p533_p5 = pnand %p532_p4, %p526_p1 }
  0x2b   :  { %536 = shalt.err (!%p533_p5)
}
  0x2c   :  { %59 = dma.hbm_to_vmem [thread:$0]  %s651_s4, 16, %s57_s16, [#allocation9]  }
  0x2d   :  { %557 = dma.done.wait [#allocation3], 2816  }
  0x2e   :  { %558 = vsyncadd [#allocation3], 4294964480 }
  0x2f   :  { %559 = dma.done.wait [#allocation6], 256  }
  0x30   :  { %560 = vsyncadd [#allocation6], 4294967040 }
  0x31   :  { %561 = dma.done.wait [#allocation9], 16  }
  0x32   :  { %562 = vsyncadd [#allocation9], 4294967280  ;;  %v76_v0 = vld [vmem:[#allocation2] sm:$0xff]  ;;  %v77_v1 = vld [vmem:[#allocation2 + $0x8] sm:$0xff]  ;;  %vm107_vm0 = vcmask 728064   ;;  %v571_v45 = vmov 0.0   ;;  %v137_v46 = vlaneseq }
  0x33   :  { %v78_v2 = vld [vmem:[#allocation2 + $0x10] sm:$0xff]  ;;  %v98_v3 = vadd.f32 %v77_v1, %v76_v0  ;;  %v79_v4 = vld [vmem:[#allocation2 + $0x18] sm:$0xff]  ;;  %v80_v7 = vld [vmem:[#allocation2 + $0x20] sm:$0xff]  ;;  %429 = vmatprep.subr.mxu0 %v571_v45  ;;  %vm572_vm1 = vmmov 0   ;;  %434 = vmatprep.subr.mxu1 %v571_v45  ;;  %vm147_vm2 = vcmask 1041409   ;;  %vm149_vm3 = vcmask 64512  }
  0x34   :  { %v87_v6 = vld [vmem:[#allocation2 + $0x58] sm:$0xff]  ;;  %v88_v8 = vld [vmem:[#allocation2 + $0x60] sm:$0xff]  ;;  %v89_v9 = vld [vmem:[#allocation2 + $0x68] sm:$0xff]  ;;  %431 = vmatprep.mubr.msk.f32.mxu0 %vm572_vm1, %v571_v45  ;;  %436 = vmatprep.mubr.msk.f32.mxu1 %vm572_vm1, %v571_v45  ;;  %v138_v47 = vand.u32 127, %v137_v46  ;;  %v140_v48 = vshrl.u32 %v137_v46, 7  ;;  %vm386_vm4 = vcmask 74752  }
  0x35   :  { %v99_v5 = vadd.f32 %v98_v3, %v78_v2  ;;  %v112_v11 = vadd.f32 %v88_v8, %v87_v6  ;;  %v81_v12 = vld [vmem:[#allocation2 + $0x28] sm:$0xff]  ;;  %v90_v13 = vld [vmem:[#allocation2 + $0x70] sm:$0xff]  ;;  %v91_v17 = vld [vmem:[#allocation2 + $0x78] sm:$0xff] }
  0x36   :  { %v82_v16 = vld [vmem:[#allocation2 + $0x30] sm:$0xff]  ;;  %v83_v20 = vld [vmem:[#allocation2 + $0x38] sm:$0xff]  ;;  %v92_v21 = vld [vmem:[#allocation2 + $0x80] sm:$0xff]  ;;  %v141_v50 = vsub.s32 %v138_v47, %v140_v48 }
  0x37   :  { %v100_v10 = vadd.f32 %v99_v5, %v79_v4  ;;  %v113_v15 = vadd.f32 %v112_v11, %v89_v9  ;;  %v84_v24 = vld [vmem:[#allocation2 + $0x40] sm:$0xff]  ;;  %v93_v25 = vld [vmem:[#allocation2 + $0x88] sm:$0xff]  ;;  %v86_v26 = vld [vmem:[#allocation2 + $0x50] sm:$0xff] }
  0x38   :  { %v85_v29 = vld [vmem:[#allocation2 + $0x48] sm:$0xff]  ;;  %v94_v30 = vld [vmem:[#allocation2 + $0x90] sm:$0xff]  ;;  %v108_v33 = vsel %vm107_vm0, %v86_v26, 0.0  ;;  %v95_v34 = vld [vmem:[#allocation2 + $0x98] sm:$0xff] }
  0x39   :  { %v101_v14 = vadd.f32 %v100_v10, %v80_v7  ;;  %v114_v19 = vadd.f32 %v113_v15, %v90_v13  ;;  %v97_v36 = vld [vmem:[#allocation2 + $0xa8] sm:$0xff]  ;;  %v96_v38 = vld [vmem:[#allocation2 + $0xa0] sm:$0xff]  ;;  %v127_v44 = vld [vmem:[#allocation5] sm:$0xff] }
  0x3a   :  { %v121_v41 = vsel %vm107_vm0, %v97_v36, 0.0  ;;  %430 = vmatpush3.msra.mxu0 %v127_v44  ;;  %v223_v57 = vld [vmem:[#allocation7] sm:$0xff]  ;;  %v417_v58 = vld [vmem:[%s649_s2] ss:$0 sm:$0xff] }
  0x3b   :  { %v102_v18 = vadd.f32 %v101_v14, %v81_v12  ;;  %v115_v23 = vadd.f32 %v114_v19, %v91_v17  ;;  %439 = vmatprep.subr.mxu0 %v571_v45  ;;  %435 = vmatpush3.msra.mxu1 %v223_v57  ;;  %v305_v63 = vld [vmem:[%s652_s5] sm:$0xff]  ;;  %s573_s5 = smov [#allocation10]  }
  0x3c   :  { %v419_v0 = vld [vmem:[#allocation8] ss:$0 sm:$0xff] }
  0x3d   :  { %v103_v22 = vadd.f32 %v102_v18, %v82_v16  ;;  %v116_v28 = vadd.f32 %v115_v23, %v92_v21  ;;  %v421_v5 = vld [vmem:[%s653_s6] ss:$0 sm:$0xff]  ;;  %s406_s6 = sshll.u32 %s573_s5, 4  ;;  %s407_s6 = int_to_ptr.vmem [resolvable:$true] %s406_s6 }
  0x3e   :  { %s537_s25 = scalar_lea.vmem %s407_s6, 32  ;;  %p542_p7 = scmp.lt.s32.totalorder %s407_s6, %s407_s6 }
  0x3f   :  { %v104_v27 = vadd.f32 %v103_v22, %v83_v20  ;;  %v117_v32 = vadd.f32 %v116_v28, %v93_v25  ;;  %p538_p6 = scmp.ne.s32.totalorder %s407_s6, %s537_s25  ;;  %p543_p8 = scmp.lt.s32.totalorder %s537_s25, %s537_s25 }
  0x41   :  { %v105_v31 = vadd.f32 %v104_v27, %v84_v24  ;;  %v118_v37 = vadd.f32 %v117_v32, %v94_v30  ;;  %p544_p9 = por %p543_p8, %p542_p7 }
  0x43   :  { %v106_v35 = vadd.f32 %v105_v31, %v85_v29  ;;  %v119_v40 = vadd.f32 %v118_v37, %v95_v34  ;;  %p545_p10 = pnand %p544_p9, %p538_p6 }
  0x45   :  { %v109_v39 = vadd.f32 %v108_v33, %v106_v35  ;;  %v120_v42 = vadd.f32 %v119_v40, %v96_v38 }
  0x47   :  { %110 = vadd.xlane.f32.xlu0 %v109_v39  ;;  %v122_v43 = vadd.f32 %v121_v41, %v120_v42 }
  0x4b   :  { %123 = vadd.xlane.f32.xlu0 %v122_v43 }
  0xd0   :  { %v111_v49 = vpop.xlane.xlu0 %110 }
  0xd1   :  { %v125_v51 = vmul.f32 0.0007304602, %v111_v49 }
  0xd3   :  { %v142_v54 = vrot.slane %v125_v51, %v141_v50 }
  0xd4   :  { %v124_v52 = vpop.xlane.xlu0 %123 }
  0xd5   :  { %v126_v53 = vmul.f32 0.0007304602, %v124_v52 }
  0xd7   :  { %v146_v55 = vrot.slane %v126_v53, %v141_v50 }
  0xd9   :  { %v148_v56 = vsel %vm147_vm2, %v146_v55, %v142_v54 }
  0xda   :  { %432 = vmatmul.mubr.msk.f32.vlgmr.msra.gmra.mxu0 %vm149_vm3, %v148_v56 }
  0xdb   :  { %441 = vmatprep.mubr.msk.f32.mxu0 %vm572_vm1, %v571_v45  ;;  %440 = vmatpush3.msra.mxu0 %v305_v63 }
 0x19a   :  { %v218_v59 = vpop.f32.mrf.mxu0 }
 0x19b   :  { %v219_v60 = vadd.f32 %v417_v58, %v218_v59 }
 0x19c   :  { %v433_v61 = vpop.f32.mrf.mxu0 }
 0x19d   :  { %v222_v62 = vmax.f32 %v219_v60, 0.0 }
 0x19f   :  { %437 = vmatmul.mubr.msk.f32.vlgmr.msra.gmra.mxu1 %vm149_vm3, %v222_v62 }
 0x25f   :  { %v300_v1 = vpop.f32.mrf.mxu1 }
 0x260   :  { %v301_v2 = vadd.f32 %v419_v0, %v300_v1 }
 0x261   :  { %v438_v3 = vpop.f32.mrf.mxu1 }
 0x262   :  { %v304_v4 = vmax.f32 %v301_v2, 0.0 }
 0x264   :  { %442 = vmatmul.mubr.msk.f32.vlgmr.msra.gmra.mxu0 %vm149_vm3, %v304_v4 }
 0x324   :  { %v382_v6 = vpop.f32.mrf.mxu0 }
 0x325   :  { %v383_v7 = vadd.f32 %v421_v5, %v382_v6 }
 0x326   :  { %v443_v8 = vpop.f32.mrf.mxu0 }
 0x327   :  { %v387_v9 = vsel %vm386_vm4, %v383_v7, -inf }
 0x328   :  { %388 = vmax.xlane.f32.xlu1 %v387_v9 }
 0x3b1   :  { %v389_v10 = vpop.xlane.xlu1 %388 }
 0x3b2   :  { %v390_v11 = vsub.f32 %v383_v7, %v389_v10 }
 0x3b4   :  { %v391_v12 = vmul.f32 1.442695, %v390_v11 }
 0x3b6   :  { %453 = vpow2.f32 %v391_v12 }
 0x3c3   :  { %v454_v13 = vpop.eup %453 }
 0x3c4   :  { %v393_v14 = vsel %vm386_vm4, %v454_v13, 0.0 }
 0x3c5   :  { %394 = vadd.xlane.f32.xlu1 %v393_v14 }
 0x44e   :  { %v395_v15 = vpop.xlane.xlu1 %394 }
 0x44f   :  { %455 = vlog2.f32 %v395_v15 }
 0x45c   :  { %v456_v16 = vpop.eup %455 }
 0x45d   :  { %v397_v17 = vmul.f32 0.6931472, %v456_v16 }
 0x45f   :  { %v398_v18 = vsub.f32 %v390_v11, %v397_v17 }
 0x461   :  { %399 = vst.msk [vmem:[#allocation10] sm:$0x3] %vm386_vm4, %v398_v18 }
 0x462   :  { %548 = shalt.err (!%p545_p10)
}
 0x463   :  { %409 = dma.vmem_to_hbm [thread:$0]  %s407_s6, 32, %s654_s7, [#allocation4]  }
 0x464   :  { %563 = dma.done.wait [#allocation4], 32  }
 0x465   :  { %564 = vsyncadd [#allocation4], 4294967264 }
 0x466   :  { %413 = vsyncpa [#allocation3], 1 }
 0x467   :  { %414 = vsyncpa [#allocation6], 1 }
 0x468   :  { %415 = vsyncpa [#allocation9], 1 }
 0x469   :  { %416 = vsyncpa [#allocation4], 1 }

</bundles_post_ra>
